<compile_context>
chip_gen: v5e
topology: v5e:2x2
jax: 0.10.0
libtpu: 0.0.40
codegen_flags: <defaults>
</compile_context>

<pallas_src>
import jax
import jax.numpy as jnp
from jax.experimental import pallas as pl
from jax.experimental.pallas import tpu as pltpu


def actor_critic_kernel(x_ref, w1_ref, b1_ref, w2_ref, b2_ref, out_ref):
    """One fused MLP tile: out = relu(x @ W1 + b1) @ W2 + b2.

    W1 = [wa1 | wc1]  (actor hidden in cols [:H], critic hidden in cols [H:])
    W2 block-diagonal: actor half -> mu columns, critic half -> value column.
    """
    x = x_ref[...]
    h = jnp.dot(x, w1_ref[...], preferred_element_type=jnp.float32) + b1_ref[...]
    h = jnp.maximum(h, 0.0)
    out = jnp.dot(h, w2_ref[...], preferred_element_type=jnp.float32) + b2_ref[...]
    out_ref[...] = out.astype(out_ref.dtype)


def actor_critic_forward(x, params, tile_b=512):
    """Runs the ActorCritic forward pass. Returns (mu, std, value)."""
    B, num_inputs = x.shape
    hidden = params["wa1"].shape[1]
    num_outputs = params["wa2"].shape[1]
    n_fused_out = num_outputs + 1  # [mu | value]

    # ---- fuse weights (cheap, done in plain JAX; could be cached) ----
    w1 = jnp.concatenate([params["wa1"], params["wc1"]], axis=1)   # [in, 2H]
    b1 = jnp.concatenate([params["ba1"], params["bc1"]], axis=1)   # [1, 2H]
    w2 = jnp.zeros((2 * hidden, n_fused_out), jnp.float32)
    w2 = w2.at[:hidden, :num_outputs].set(params["wa2"])           # actor -> mu
    w2 = w2.at[hidden:, num_outputs:].set(params["wc2"])           # critic -> value
    b2 = jnp.concatenate([params["ba2"], params["bc2"]], axis=1)   # [1, O+1]

    # ---- batch tiling (pad B up to a tile multiple when gridded) ----
    if B <= tile_b:
        TILE = B              # single block == full array (any B is legal)
        Bp = B
        xp = x
    else:
        TILE = tile_b         # multiple of 8 -> legal sublane tiling
        Bp = pl.cdiv(B, TILE) * TILE
        xp = jnp.pad(x, ((0, Bp - B), (0, 0))) if Bp != B else x

    grid = (Bp // TILE,)

    fused = pl.pallas_call(
        actor_critic_kernel,
        out_shape=jax.ShapeDtypeStruct((Bp, n_fused_out), jnp.float32),
        grid=grid,
        in_specs=[
            pl.BlockSpec((TILE, num_inputs), lambda i: (i, 0)),      # x tile
            pl.BlockSpec((num_inputs, 2 * hidden), lambda i: (0, 0)),  # W1 resident
            pl.BlockSpec((1, 2 * hidden), lambda i: (0, 0)),           # b1 resident
            pl.BlockSpec((2 * hidden, n_fused_out), lambda i: (0, 0)),  # W2 resident
            pl.BlockSpec((1, n_fused_out), lambda i: (0, 0)),           # b2 resident
        ],
        out_specs=pl.BlockSpec((TILE, n_fused_out), lambda i: (i, 0)),
        compiler_params=pltpu.CompilerParams(
            dimension_semantics=("parallel",)),
    )(xp, w1, b1, w2, b2)

    mu = fused[:B, :num_outputs]
    value = fused[:B, num_outputs:]
    # std = exp(log_std).expand_as(mu): batch-independent, so computed here.
    std = jnp.broadcast_to(jnp.exp(params["log_std"]), (B, num_outputs))
    return mu, std, value


def init_params(key, num_inputs, num_outputs, hidden_size, std=0.0):
    """Mirrors init_weights: Linear weights ~ N(0, 0.1), biases = 0.1,
    log_std = ones(1, num_outputs) * std.  Weights stored as [in, out]."""
    ks = jax.random.split(key, 4)
    return {
        # critic
        "wc1": 0.1 * jax.random.normal(ks[0], (num_inputs, hidden_size), jnp.float32),
        "bc1": jnp.full((1, hidden_size), 0.1, jnp.float32),
        "wc2": 0.1 * jax.random.normal(ks[1], (hidden_size, 1), jnp.float32),
        "bc2": jnp.full((1, 1), 0.1, jnp.float32),
        # actor
        "wa1": 0.1 * jax.random.normal(ks[2], (num_inputs, hidden_size), jnp.float32),
        "ba1": jnp.full((1, hidden_size), 0.1, jnp.float32),
        "wa2": 0.1 * jax.random.normal(ks[3], (hidden_size, num_outputs), jnp.float32),
        "ba2": jnp.full((1, num_outputs), 0.1, jnp.float32),
        # log_std parameter
        "log_std": jnp.full((1, num_outputs), std, jnp.float32),
    }


def _reference(x, params):
    hc = jnp.maximum(x @ params["wc1"] + params["bc1"], 0.0)
    value = hc @ params["wc2"] + params["bc2"]
    ha = jnp.maximum(x @ params["wa1"] + params["ba1"], 0.0)
    mu = ha @ params["wa2"] + params["ba2"]
    std = jnp.broadcast_to(jnp.exp(params["log_std"]), mu.shape)
    return mu, std, value


if __name__ == "__main__":
    key = jax.random.PRNGKey(0)
    k_param, k_x1, k_x2 = jax.random.split(key, 3)

    num_inputs = 32
    num_outputs = 4
    hidden_size = 32

    params = init_params(k_param, num_inputs, num_outputs, hidden_size, std=0.0)

    # --- small batch (single-block path) ---
    batch = 8
    x = jax.random.normal(k_x1, (batch, num_inputs), jnp.float32)
    mu, std, value = actor_critic_forward(x, params)
    jax.block_until_ready((mu, std, value))

    mu_r, std_r, value_r = _reference(x, params)
    assert mu.shape == (batch, num_outputs)
    assert std.shape == (batch, num_outputs)
    assert value.shape == (batch, 1)
    assert jnp.allclose(mu, mu_r, atol=1e-5), "mu mismatch (small batch)"
    assert jnp.allclose(std, std_r, atol=1e-6), "std mismatch (small batch)"
    assert jnp.allclose(value, value_r, atol=1e-5), "value mismatch (small batch)"

    # --- larger, non-multiple batch (exercises grid + padding path) ---
    batch2 = 1037
    x2 = jax.random.normal(k_x2, (batch2, num_inputs), jnp.float32)
    mu2, std2, value2 = actor_critic_forward(x2, params, tile_b=512)
    jax.block_until_ready((mu2, std2, value2))

    mu2_r, std2_r, value2_r = _reference(x2, params)
    assert mu2.shape == (batch2, num_outputs)
    assert value2.shape == (batch2, 1)
    assert jnp.allclose(mu2, mu2_r, atol=1e-5), "mu mismatch (gridded batch)"
    assert jnp.allclose(std2, std2_r, atol=1e-6), "std mismatch (gridded batch)"
    assert jnp.allclose(value2, value2_r, atol=1e-5), "value mismatch (gridded batch)"

    print("KERNEL_OK")
</pallas_src>

<mosaic_0001>
module attributes {stable_mosaic.version = 11 : i64} {
  func.func @actor_critic_kernel(%arg0: i32, %arg1: memref<8x32xf32, #tpu.memory_space<vmem>>, %arg2: memref<32x64xf32, #tpu.memory_space<vmem>>, %arg3: memref<1x64xf32, #tpu.memory_space<vmem>>, %arg4: memref<64x5xf32, #tpu.memory_space<vmem>>, %arg5: memref<1x5xf32, #tpu.memory_space<vmem>>, %arg6: memref<8x5xf32, #tpu.memory_space<vmem>>) attributes {dimension_semantics = [#tpu.dimension_semantics<parallel>], iteration_bounds = array<i64: 1>, scalar_prefetch = 0 : i64, scratch_operands = 0 : i64, tpu.core_type = #tpu.core_type<tc>, window_params = [{transform_indices = @transform_0, window_bounds = array<i64: 8, 32>}, {pipeline_mode = #tpu.pipeline_mode<synchronous>, transform_indices = @transform_1, window_bounds = array<i64: 32, 64>}, {pipeline_mode = #tpu.pipeline_mode<synchronous>, transform_indices = @transform_2, window_bounds = array<i64: 1, 64>}, {pipeline_mode = #tpu.pipeline_mode<synchronous>, transform_indices = @transform_3, window_bounds = array<i64: 64, 5>}, {pipeline_mode = #tpu.pipeline_mode<synchronous>, transform_indices = @transform_4, window_bounds = array<i64: 1, 5>}, {transform_indices = @transform_5, window_bounds = array<i64: 8, 5>}]} {
    %c0 = arith.constant 0 : index
    %c0_0 = arith.constant 0 : index
    %0 = vector.load %arg1[%c0, %c0_0] : memref<8x32xf32, #tpu.memory_space<vmem>>, vector<8x32xf32>
    %c0_1 = arith.constant 0 : index
    %c0_2 = arith.constant 0 : index
    %1 = vector.load %arg2[%c0_1, %c0_2] : memref<32x64xf32, #tpu.memory_space<vmem>>, vector<32x64xf32>
    %cst = arith.constant dense<0.000000e+00> : vector<8x64xf32>
    %2 = tpu.matmul %0, %1, %cst {dimension_numbers = #tpu.dot_dimension_numbers<[1], [0], [0], [1], [0, 0, 1, 1], [], []>} : vector<8x32xf32>, vector<32x64xf32>, vector<8x64xf32> -> vector<8x64xf32>
    %c0_3 = arith.constant 0 : index
    %c0_4 = arith.constant 0 : index
    %3 = vector.load %arg3[%c0_3, %c0_4] : memref<1x64xf32, #tpu.memory_space<vmem>>, vector<1x64xf32>
    %4 = vector.broadcast %3 : vector<1x64xf32> to vector<8x64xf32>
    %5 = arith.addf %2, %4 : vector<8x64xf32>
    %cst_5 = arith.constant 0.000000e+00 : f32
    %6 = vector.broadcast %cst_5 : f32 to vector<8x64xf32>
    %7 = arith.maximumf %5, %6 : vector<8x64xf32>
    %c0_6 = arith.constant 0 : index
    %c0_7 = arith.constant 0 : index
    %8 = vector.load %arg4[%c0_6, %c0_7] : memref<64x5xf32, #tpu.memory_space<vmem>>, vector<64x5xf32>
    %cst_8 = arith.constant dense<0.000000e+00> : vector<8x5xf32>
    %9 = tpu.matmul %7, %8, %cst_8 {dimension_numbers = #tpu.dot_dimension_numbers<[1], [0], [0], [1], [0, 0, 1, 1], [], []>} : vector<8x64xf32>, vector<64x5xf32>, vector<8x5xf32> -> vector<8x5xf32>
    %c0_9 = arith.constant 0 : index
    %c0_10 = arith.constant 0 : index
    %10 = vector.load %arg5[%c0_9, %c0_10] : memref<1x5xf32, #tpu.memory_space<vmem>>, vector<1x5xf32>
    %11 = vector.broadcast %10 : vector<1x5xf32> to vector<8x5xf32>
    %12 = arith.addf %9, %11 : vector<8x5xf32>
    %c0_11 = arith.constant 0 : index
    %c0_12 = arith.constant 0 : index
    %13 = vector.load %arg6[%c0_11, %c0_12] : memref<8x5xf32, #tpu.memory_space<vmem>>, vector<8x5xf32>
    tpu.vector_store %arg6[%c0_11, %c0_12], %12 {strides = array<i32>} : memref<8x5xf32, #tpu.memory_space<vmem>>, vector<8x5xf32>,
    return
  }
  func.func @transform_0(%arg0: i32) -> (i32, i32) {
    %c0_i32 = arith.constant 0 : i32
    %c0_i32_0 = arith.constant 0 : i32
    return %arg0, %c0_i32 : i32, i32
  }
  func.func @transform_1(%arg0: i32) -> (i32, i32) {
    %c0_i32 = arith.constant 0 : i32
    %c0_i32_0 = arith.constant 0 : i32
    %c0_i32_1 = arith.constant 0 : i32
    return %c0_i32, %c0_i32_0 : i32, i32
  }
  func.func @transform_2(%arg0: i32) -> (i32, i32) {
    %c0_i32 = arith.constant 0 : i32
    %c0_i32_0 = arith.constant 0 : i32
    %c0_i32_1 = arith.constant 0 : i32
    return %c0_i32, %c0_i32_0 : i32, i32
  }
  func.func @transform_3(%arg0: i32) -> (i32, i32) {
    %c0_i32 = arith.constant 0 : i32
    %c0_i32_0 = arith.constant 0 : i32
    %c0_i32_1 = arith.constant 0 : i32
    return %c0_i32, %c0_i32_0 : i32, i32
  }
  func.func @transform_4(%arg0: i32) -> (i32, i32) {
    %c0_i32 = arith.constant 0 : i32
    %c0_i32_0 = arith.constant 0 : i32
    %c0_i32_1 = arith.constant 0 : i32
    return %c0_i32, %c0_i32_0 : i32, i32
  }
  func.func @transform_5(%arg0: i32) -> (i32, i32) {
    %c0_i32 = arith.constant 0 : i32
    %c0_i32_0 = arith.constant 0 : i32
    return %arg0, %c0_i32 : i32, i32
  }
}

</mosaic_0001>

<bundles_post_ra>
// kernel: tpu_custom_call.1
= control target key start
LH: loop header
LB: loop body
LE: loop exit
PB: predicated region body
PF: predicated region fallthrough
CT: control target
= control target key end

     0   :  { %s219_s0 = inlined_call_operand.vmem [shape: f32[8,32], index: 0, kind: input, shape index: {}]   ;;  %s220_s1 = inlined_call_operand.vmem [shape: f32[32,64], index: 1, kind: input, shape index: {}]   ;;  %s221_s2 = inlined_call_operand.vmem [shape: f32[1,64], index: 2, kind: input, shape index: {}]   ;;  %s222_s3 = inlined_call_operand.vmem [shape: f32[64,5], index: 3, kind: input, shape index: {}]   ;;  %s223_s4 = inlined_call_operand.vmem [shape: f32[1,5], index: 4, kind: input, shape index: {}]   ;;  %s224_s5 = inlined_call_operand.hbm [shape: f32[8,5], index: 5, kind: output, shape index: {}]  }
   0x1   :  { %v25_v0 = vld [vmem:[%s220_s1 + $0x18] sm:$0xff]  ;;  %v24_v1 = vld [vmem:[%s220_s1 + $0x10] sm:$0xff]  ;;  %v23_v3 = vld [vmem:[%s220_s1 + $0x8] sm:$0xff] }
   0x2   :  { %46 = vmatpush.msra.mxu0 %v25_v0  ;;  %v62_v2 = vld [vmem:[%s222_s3 + $0x38] sm:$0xff]  ;;  %v61_v4 = vld [vmem:[%s222_s3 + $0x30] sm:$0xff]  ;;  %v60_v5 = vld [vmem:[%s222_s3 + $0x28] sm:$0xff] }
   0x3   :  { %79 = vmatpush.msra.mxu1 %v62_v2  ;;  %v22_v6 = vld [vmem:[%s220_s1] sm:$0xff] }
   0x4   :  { %47 = vmatpush.msra.mxu0 %v24_v1 }
   0x5   :  { %80 = vmatpush.msra.mxu1 %v61_v4 }
   0x6   :  { %10 = vsyncpa [#allocation3], 0  ;;  %48 = vmatpush.msra.mxu0 %v23_v3  ;;  %v21_v7 = vld [vmem:[%s219_s0] sm:$0xff]  ;;  %vm30_vm0 = vcmask 261120   ;;  %v58_v9 = vld [vmem:[%s222_s3 + $0x18] sm:$0xff]  ;;  %vm67_vm1 = vcmask 523264  }
   0x7   :  { %v59_v8 = vld [vmem:[%s222_s3 + $0x20] sm:$0xff]  ;;  %81 = vmatpush.msra.mxu1 %v60_v5  ;;  %v57_v10 = vld [vmem:[%s222_s3 + $0x10] sm:$0xff]  ;;  %v56_v11 = vld [vmem:[%s222_s3 + $0x8] sm:$0xff]  ;;  %s140_s21 = smov [#allocation2]   ;;  %vm91_vm2 = vcmask 39936  }
   0x8   :  { %49 = vmatpush.msra.mxu0 %v22_v6  ;;  %v55_v12 = vld [vmem:[%s222_s3] sm:$0xff]  ;;  %s98_s22 = sshll.u32 %s140_s21, 4  ;;  %s100_s3 = sshll.u32 %s224_s5, 4  ;;  %s99_s22 = int_to_ptr.vmem [resolvable:$true] %s98_s22  ;;  %s101_s3 = int_to_ptr.hbm [resolvable:$true] %s100_s3 }
   0x9   :  { %109 = vmatmul.msk.f32.vlgmr.msra.gmra.mxu0 %vm30_vm0, %v21_v7  ;;  %82 = vmatpush.msra.mxu1 %v59_v8  ;;  %v112_v13 = vld [vmem:[%s221_s2] ss:$0 sm:$0xff] }
   0xa   :  { %v113_v17 = vld [vmem:[%s223_s4] ss:$0 sm:$0xff] }
   0xb   :  { %83 = vmatpush.msra.mxu1 %v58_v9 }
   0xd   :  { %84 = vmatpush.msra.mxu1 %v57_v10 }
   0xf   :  { %85 = vmatpush.msra.mxu1 %v56_v11 }
  0x11   :  { %86 = vmatpush.msra.mxu1 %v55_v12 }
  0x86   :  { %v51_v14 = vpop.f32.mrf.mxu0 }
  0x87   :  { %v52_v15 = vadd.f32 %v112_v13, %v51_v14 }
  0x89   :  { %v54_v16 = vmax.f32 %v52_v15, 0.0 }
  0x8b   :  { %110 = vmatmul.msk.f32.vlgmr.msra.gmra.mxu1 %vm67_vm1, %v54_v16 }
 0x108   :  { %v88_v18 = vpop.f32.mrf.mxu1 }
 0x109   :  { %v89_v19 = vadd.f32 %v113_v17, %v88_v18 }
 0x10b   :  { %92 = vst.msk [vmem:[#allocation2] sm:$0xff] %vm91_vm2, %v89_v19 }
 0x10c   :  { %103 = dma.vmem_to_hbm [thread:$0]  %s99_s22, 128, %s101_s3, [#allocation3]  }
 0x10d   :  { %138 = dma.done.wait [#allocation3], 128  }
 0x10e   :  { %139 = vsyncadd [#allocation3], 4294967168 }
 0x10f   :  { %108 = vsyncpa [#allocation3], 1 }

</bundles_post_ra>
